<compile_context>
chip_gen: v6e
topology: v6e:2x2x1
jax: 0.10.0
libtpu: 0.0.40
codegen_flags: <defaults>
</compile_context>

<pallas_src>
import functools

import jax
import jax.numpy as jnp
from jax.experimental import pallas as pl
from jax.experimental.pallas import tpu as pltpu

LANE = 128       # TPU lane width (last dim)
SUBLANE = 8      # TPU sublane width (second-to-last dim)


def _round_up(x, m):
    return (x + m - 1) // m * m


def _cond_prior_kernel(c_ref, w1_ref, b1_ref, w2_ref, b2_ref, out_ref,
                       *, latent_size):
    # Hidden layer: h = relu(c @ w1 + b1), f32 accumulation on the MXU.
    h = jnp.dot(c_ref[...], w1_ref[...], preferred_element_type=jnp.float32)
    h = jnp.maximum(h + b1_ref[...], 0.0)                     # (tb, H) + (1, H)

    # Fused output head: p = h @ w2 + b2   (lanes = [mean | log_var | pad]).
    p = jnp.dot(h.astype(w2_ref.dtype), w2_ref[...],
                preferred_element_type=jnp.float32)
    p = p + b2_ref[...]                                       # (tb, L2p) + (1, L2p)

    # Clamp only the log_var lanes (col >= UNPADDED latent_size).  Pad lanes
    # (col >= 2*latent) also get clamped, but the wrapper slices them off.
    # This is VPU filler hidden under the MXU — effectively free.
    col = jax.lax.broadcasted_iota(jnp.int32, p.shape, dimension=1)
    p_clamped = jnp.clip(p, -10.0, 10.0)
    out = jnp.where(col >= latent_size, p_clamped, p)

    out_ref[...] = out.astype(out_ref.dtype)                  # cast only at store


def pad_prior_params(w1, b1, w2, b2):
    """One-time param prep: reshape biases to 2-D and pad the head width
    (2*latent) up to a lane multiple of 128 so the kernel output is lane-dense."""
    H, L2 = w2.shape
    L2p = _round_up(L2, LANE)
    if L2p != L2:
        w2 = jnp.pad(w2, ((0, 0), (0, L2p - L2)))
        b2 = jnp.pad(b2, ((0, L2p - L2),))
    return w1, b1.reshape(1, H), w2, b2.reshape(1, L2p)


def _pick_batch_tile(B, block_b):
    if B <= SUBLANE:
        return B                                   # single sublane tile (full dim)
    tb = min(block_b, B)
    tb = max(SUBLANE, (tb // SUBLANE) * SUBLANE)
    # v7x has 2 TensorCores: make sure the "parallel" batch axis has >= 2 steps
    # whenever the batch is big enough to split.
    if pl.cdiv(B, tb) < 2:
        half = _round_up((B + 1) // 2, SUBLANE)
        tb = max(SUBLANE, min(tb, half))
    return tb


def conditional_prior_forward(c, w1, b1_2d, w2, b2_2d, latent_size,
                              block_b=1024, param_dtype=None):
    """c: (B, context); w1: (context, hidden); b1_2d: (1, hidden);
       w2: (hidden, L2p); b2_2d: (1, L2p)  ->  (mean, log_var).
       Params must have gone through pad_prior_params()."""
    B, C = c.shape
    H = w1.shape[1]
    L2p = w2.shape[1]                              # padded 2*latent (mult of 128)

    if param_dtype is not None:
        # bf16 on v6e/v7x: halves HBM traffic + resident-weight VMEM footprint;
        # accumulation stays f32 inside the kernel.
        c = c.astype(param_dtype)
        w1 = w1.astype(param_dtype)
        w2 = w2.astype(param_dtype)

    in_item = jnp.dtype(c.dtype).itemsize
    w_item = jnp.dtype(w1.dtype).itemsize

    def footprint(tb):
        io = 2 * tb * (C * in_item + L2p * 4)          # double-buffered I/O tiles
        weights = (C * H + H * L2p) * w_item           # single-buffered (Buffered(1))
        biases = (H + L2p) * 4
        inter = 2 * tb * H * 4                         # h intermediate (+ slack)
        return io + weights + biases + inter

    tb = _pick_batch_tile(B, block_b)
    VMEM_TARGET = 32 << 20                             # keep v7x (64 MiB phys) happy
    while tb > SUBLANE and footprint(tb) > VMEM_TARGET:
        tb = max(SUBLANE, ((tb // 2) // SUBLANE) * SUBLANE)

    grid = (pl.cdiv(B, tb),)
    vmem_limit = int(min(max(footprint(tb) + (2 << 20), 8 << 20), 48 << 20))

    kernel = functools.partial(_cond_prior_kernel, latent_size=latent_size)
    resident = dict(pipeline_mode=pl.Buffered(1))      # grid-invariant: 1 buffer

    out = pl.pallas_call(
        kernel,
        out_shape=jax.ShapeDtypeStruct((B, L2p), jnp.float32),
        grid=grid,
        in_specs=[
            pl.BlockSpec((tb, C), lambda i: (i, 0)),               # context: tiled over B
            pl.BlockSpec((C, H), lambda i: (0, 0), **resident),    # w1: VMEM-resident
            pl.BlockSpec((1, H), lambda i: (0, 0), **resident),    # b1
            pl.BlockSpec((H, L2p), lambda i: (0, 0), **resident),  # w2 (padded head)
            pl.BlockSpec((1, L2p), lambda i: (0, 0), **resident),  # b2
        ],
        out_specs=pl.BlockSpec((tb, L2p), lambda i: (i, 0)),
        compiler_params=pltpu.CompilerParams(
            dimension_semantics=("parallel",),         # shard batch across v7x TCs
            vmem_limit_bytes=vmem_limit),
    )(c, w1, b1_2d, w2, b2_2d)

    mean = out[:, :latent_size]
    log_var = out[:, latent_size:2 * latent_size]
    return mean, log_var


def _init_params(key, context_size, latent_size, hidden_size):
    """Deterministic init mimicking torch.nn.Linear default (+/- 1/sqrt(fan_in))."""
    k1, k2, k3, k4 = jax.random.split(key, 4)
    bound1 = 1.0 / jnp.sqrt(context_size)
    bound2 = 1.0 / jnp.sqrt(hidden_size)
    w1 = jax.random.uniform(k1, (context_size, hidden_size), jnp.float32, -bound1, bound1)
    b1 = jax.random.uniform(k2, (hidden_size,), jnp.float32, -bound1, bound1)
    w2 = jax.random.uniform(k3, (hidden_size, 2 * latent_size), jnp.float32, -bound2, bound2)
    b2 = jax.random.uniform(k4, (2 * latent_size,), jnp.float32, -bound2, bound2)
    return w1, b1, w2, b2


if __name__ == "__main__":
    context_size = 8
    latent_size = 4
    hidden_size = 16
    batch = 8

    key = jax.random.PRNGKey(0)
    k_params, k_input = jax.random.split(key)
    w1, b1, w2, b2 = _init_params(k_params, context_size, latent_size, hidden_size)
    c = jax.random.normal(k_input, (batch, context_size), jnp.float32)

    # One-time param prep (bias reshape + lane padding of the head).
    w1p, b1p, w2p, b2p = pad_prior_params(w1, b1, w2, b2)

    mean, log_var = conditional_prior_forward(c, w1p, b1p, w2p, b2p, latent_size)
    jax.block_until_ready((mean, log_var))

    # Pure-JAX reference check (unpadded params).
    h_ref = jnp.maximum(c @ w1 + b1, 0.0)
    params_ref = h_ref @ w2 + b2
    mean_ref = params_ref[:, :latent_size]
    logvar_ref = jnp.clip(params_ref[:, latent_size:], -10.0, 10.0)
    assert mean.shape == mean_ref.shape and log_var.shape == logvar_ref.shape
    assert jnp.allclose(mean, mean_ref, atol=1e-5), "mean mismatch"
    assert jnp.allclose(log_var, logvar_ref, atol=1e-5), "log_var mismatch"

    print("KERNEL_OK")
</pallas_src>

<mosaic_0001>
module attributes {stable_mosaic.version = 11 : i64} {
  func.func @_cond_prior_kernel(%arg0: i32, %arg1: memref<8x8xf32, #tpu.memory_space<vmem>>, %arg2: memref<8x16xf32, #tpu.memory_space<vmem>>, %arg3: memref<1x16xf32, #tpu.memory_space<vmem>>, %arg4: memref<16x128xf32, #tpu.memory_space<vmem>>, %arg5: memref<1x128xf32, #tpu.memory_space<vmem>>, %arg6: memref<8x128xf32, #tpu.memory_space<vmem>>) attributes {dimension_semantics = [#tpu.dimension_semantics<parallel>], iteration_bounds = array<i64: 1>, scalar_prefetch = 0 : i64, scratch_operands = 0 : i64, tpu.core_type = #tpu.core_type<tc>, window_params = [{transform_indices = @transform_0, window_bounds = array<i64: 8, 8>}, {pipeline_mode = #tpu.pipeline_mode<synchronous>, transform_indices = @transform_1, window_bounds = array<i64: 8, 16>}, {pipeline_mode = #tpu.pipeline_mode<synchronous>, transform_indices = @transform_2, window_bounds = array<i64: 1, 16>}, {pipeline_mode = #tpu.pipeline_mode<synchronous>, transform_indices = @transform_3, window_bounds = array<i64: 16, 128>}, {pipeline_mode = #tpu.pipeline_mode<synchronous>, transform_indices = @transform_4, window_bounds = array<i64: 1, 128>}, {transform_indices = @transform_5, window_bounds = array<i64: 8, 128>}]} {
    %c0 = arith.constant 0 : index
    %c0_0 = arith.constant 0 : index
    %0 = vector.load %arg1[%c0, %c0_0] : memref<8x8xf32, #tpu.memory_space<vmem>>, vector<8x8xf32>
    %c0_1 = arith.constant 0 : index
    %c0_2 = arith.constant 0 : index
    %1 = vector.load %arg2[%c0_1, %c0_2] : memref<8x16xf32, #tpu.memory_space<vmem>>, vector<8x16xf32>
    %cst = arith.constant dense<0.000000e+00> : vector<8x16xf32>
    %2 = tpu.matmul %0, %1, %cst {dimension_numbers = #tpu.dot_dimension_numbers<[1], [0], [0], [1], [0, 0, 1, 1], [], []>} : vector<8x8xf32>, vector<8x16xf32>, vector<8x16xf32> -> vector<8x16xf32>
    %c0_3 = arith.constant 0 : index
    %c0_4 = arith.constant 0 : index
    %3 = vector.load %arg3[%c0_3, %c0_4] : memref<1x16xf32, #tpu.memory_space<vmem>>, vector<1x16xf32>
    %4 = vector.broadcast %3 : vector<1x16xf32> to vector<8x16xf32>
    %5 = arith.addf %2, %4 : vector<8x16xf32>
    %cst_5 = arith.constant 0.000000e+00 : f32
    %6 = vector.broadcast %cst_5 : f32 to vector<8x16xf32>
    %7 = arith.maximumf %5, %6 : vector<8x16xf32>
    %c0_6 = arith.constant 0 : index
    %c0_7 = arith.constant 0 : index
    %8 = vector.load %arg4[%c0_6, %c0_7] : memref<16x128xf32, #tpu.memory_space<vmem>>, vector<16x128xf32>
    %cst_8 = arith.constant dense<0.000000e+00> : vector<8x128xf32>
    %9 = tpu.matmul %7, %8, %cst_8 {dimension_numbers = #tpu.dot_dimension_numbers<[1], [0], [0], [1], [0, 0, 1, 1], [], []>} : vector<8x16xf32>, vector<16x128xf32>, vector<8x128xf32> -> vector<8x128xf32>
    %c0_9 = arith.constant 0 : index
    %c0_10 = arith.constant 0 : index
    %10 = vector.load %arg5[%c0_9, %c0_10] : memref<1x128xf32, #tpu.memory_space<vmem>>, vector<1x128xf32>
    %11 = vector.broadcast %10 : vector<1x128xf32> to vector<8x128xf32>
    %12 = arith.addf %9, %11 : vector<8x128xf32>
    %13 = tpu.iota {dimensions = array<i32: 1>} : vector<8x128xi32>
    %cst_11 = arith.constant -1.000000e+01 : f32
    %cst_12 = arith.constant 1.000000e+01 : f32
    %14 = vector.broadcast %cst_11 : f32 to vector<8x128xf32>
    %15 = arith.maximumf %14, %12 : vector<8x128xf32>
    %16 = vector.broadcast %cst_12 : f32 to vector<8x128xf32>
    %17 = arith.minimumf %16, %15 : vector<8x128xf32>
    %c4_i32 = arith.constant 4 : i32
    %18 = vector.broadcast %c4_i32 : i32 to vector<8x128xi32>
    %19 = arith.cmpi sge, %13, %18 : vector<8x128xi32>
    %20 = arith.select %19, %17, %12 : vector<8x128xi1>, vector<8x128xf32>
    %c0_13 = arith.constant 0 : index
    %c0_14 = arith.constant 0 : index
    %21 = vector.load %arg6[%c0_13, %c0_14] : memref<8x128xf32, #tpu.memory_space<vmem>>, vector<8x128xf32>
    tpu.vector_store %arg6[%c0_13, %c0_14], %20 {strides = array<i32>} : memref<8x128xf32, #tpu.memory_space<vmem>>, vector<8x128xf32>,
    return
  }
  func.func @transform_0(%arg0: i32) -> (i32, i32) {
    %c0_i32 = arith.constant 0 : i32
    %c0_i32_0 = arith.constant 0 : i32
    return %arg0, %c0_i32 : i32, i32
  }
  func.func @transform_1(%arg0: i32) -> (i32, i32) {
    %c0_i32 = arith.constant 0 : i32
    %c0_i32_0 = arith.constant 0 : i32
    %c0_i32_1 = arith.constant 0 : i32
    return %c0_i32, %c0_i32_0 : i32, i32
  }
  func.func @transform_2(%arg0: i32) -> (i32, i32) {
    %c0_i32 = arith.constant 0 : i32
    %c0_i32_0 = arith.constant 0 : i32
    %c0_i32_1 = arith.constant 0 : i32
    return %c0_i32, %c0_i32_0 : i32, i32
  }
  func.func @transform_3(%arg0: i32) -> (i32, i32) {
    %c0_i32 = arith.constant 0 : i32
    %c0_i32_0 = arith.constant 0 : i32
    %c0_i32_1 = arith.constant 0 : i32
    return %c0_i32, %c0_i32_0 : i32, i32
  }
  func.func @transform_4(%arg0: i32) -> (i32, i32) {
    %c0_i32 = arith.constant 0 : i32
    %c0_i32_0 = arith.constant 0 : i32
    %c0_i32_1 = arith.constant 0 : i32
    return %c0_i32, %c0_i32_0 : i32, i32
  }
  func.func @transform_5(%arg0: i32) -> (i32, i32) {
    %c0_i32 = arith.constant 0 : i32
    %c0_i32_0 = arith.constant 0 : i32
    return %arg0, %c0_i32 : i32, i32
  }
}

</mosaic_0001>

<bundles_post_ra>
// kernel: tpu_custom_call.1
= control target key start
LH: loop header
LB: loop body
LE: loop exit
PB: predicated region body
PF: predicated region fallthrough
CT: control target
= control target key end

     0   :  { %10 = vsyncpa [#allocation3], 0  ;;  %s420_s0 = inlined_call_operand.hbm [shape: f32[8,8], index: 0, kind: input, shape index: {}]   ;;  %s421_s1 = inlined_call_operand.hbm [shape: f32[8,16], index: 1, kind: input, shape index: {}]   ;;  %s422_s2 = inlined_call_operand.vmem [shape: f32[1,16], index: 2, kind: input, shape index: {}]   ;;  %s423_s3 = inlined_call_operand.hbm [shape: f32[16,128], index: 3, kind: input, shape index: {}]   ;;  %s424_s4 = inlined_call_operand.vmem [shape: f32[1,128], index: 4, kind: input, shape index: {}]   ;;  %s425_s5 = inlined_call_operand.hbm [shape: f32[8,128], index: 5, kind: output, shape index: {}]  }
   0x1   :  { %11 = vsyncpa [#allocation6], 0 }
   0x2   :  { %12 = vsyncpa [#allocation4], 0  ;;  %s364_s18 = smov [#allocation5]   ;;  %s365_s20 = smov [#allocation2]  }
   0x3   :  { %s29_s19 = sshll.u32 %s364_s18, 4  ;;  %s19_s21 = sshll.u32 %s365_s20, 4  ;;  %s30_s19 = int_to_ptr.vmem [resolvable:$true] %s29_s19  ;;  %s20_s21 = int_to_ptr.vmem [resolvable:$true] %s19_s21 }
   0x4   :  { %s286_s22 = scalar_lea.vmem %s30_s19, 128  ;;  %p291_p1 = scmp.lt.s32.totalorder %s30_s19, %s30_s19 }
   0x5   :  { %p287_p0 = scmp.ne.s32.totalorder %s30_s19, %s286_s22  ;;  %p292_p2 = scmp.lt.s32.totalorder %s286_s22, %s286_s22 }
   0x7   :  { %p293_p3 = por %p292_p2, %p291_p1 }
   0x9   :  { %p294_p4 = pnand %p293_p3, %p287_p0 }
   0xb   :  { %297 = shalt.err (!%p294_p4)
}
   0xc   :  { %32 = dma.hbm_to_vmem [thread:$0]  %s421_s1, 128, %s30_s19, [#allocation6]  }
   0xd   :  { %s306_s25 = scalar_lea.vmem %s20_s21, 128  ;;  %p311_p6 = scmp.lt.s32.totalorder %s20_s21, %s20_s21 }
   0xe   :  { %p307_p5 = scmp.ne.s32.totalorder %s20_s21, %s306_s25  ;;  %p312_p7 = scmp.lt.s32.totalorder %s306_s25, %s306_s25 }
  0x10   :  { %p313_p8 = por %p312_p7, %p311_p6 }
  0x12   :  { %p314_p9 = pnand %p313_p8, %p307_p5 }
  0x14   :  { %317 = shalt.err (!%p314_p9)
}
  0x15   :  { %22 = dma.hbm_to_vmem [thread:$0]  %s420_s0, 128, %s20_s21, [#allocation3]  }
  0x16   :  { %s366_s28 = smov [#allocation7]  }
  0x17   :  { %s40_s29 = sshll.u32 %s366_s28, 4  ;;  %s41_s29 = int_to_ptr.vmem [resolvable:$true] %s40_s29 }
  0x18   :  { %s326_s30 = scalar_lea.vmem %s41_s29, 256  ;;  %p331_p11 = scmp.lt.s32.totalorder %s41_s29, %s41_s29 }
  0x19   :  { %p327_p10 = scmp.ne.s32.totalorder %s41_s29, %s326_s30  ;;  %p332_p12 = scmp.lt.s32.totalorder %s326_s30, %s326_s30 }
  0x1b   :  { %p333_p13 = por %p332_p12, %p331_p11 }
  0x1d   :  { %p334_p0 = pnand %p333_p13, %p327_p10 }
  0x1f   :  { %337 = shalt.err (!%p334_p0)
}
  0x20   :  { %s367_s1 = smov 128   ;;  %s368_s6 = smov 8  }
  0x21   :  { %46 = dma.hbm_to_vmem [thread:$0]  %s423_s3, 256, %s41_s29, [#allocation6], %s367_s1, %s367_s1, %s368_s6  }
  0x22   :  { %358 = dma.done.wait [#allocation3], 128  }
  0x23   :  { %359 = vsyncadd [#allocation3], 4294967168 }
  0x24   :  { %360 = dma.done.wait [#allocation6], 384  }
  0x25   :  { %361 = vsyncadd [#allocation6], 4294966912  ;;  %v369_v0 = vmov 0.0   ;;  %vm370_vm0 = vmmov 0   ;;  %vm67_vm1 = vcmask 64512   ;;  %v59_v1 = vld [vmem:[#allocation5] sm:$0xff]  ;;  %v225_v10 = vlaneseq }
  0x26   :  { %258 = vmatprep.subr.mxu0 %v369_v0  ;;  %260 = vmatprep.mubr.msk.f32.mxu0 %vm370_vm0, %v369_v0  ;;  %v58_v2 = vld [vmem:[#allocation2] sm:$0xff]  ;;  %v143_v3 = vld [vmem:[#allocation7 + $0x8] sm:$0xff]  ;;  %v142_v4 = vld [vmem:[#allocation7] sm:$0xff]  ;;  %vm151_vm2 = vcmask 130048   ;;  %s371_s11 = smov [#allocation8]  }
  0x27   :  { %263 = vmatprep.subr.mxu1 %v369_v0  ;;  %267 = vmatprep.mubr.msk.f32.mxu1 %vm370_vm0, %v369_v0  ;;  %v248_v5 = vld [vmem:[%s422_s2] ss:$0 sm:$0xff]  ;;  %v226_v12 = vand.u32 127, %v225_v10  ;;  %s238_s12 = sshll.u32 %s371_s11, 4  ;;  %s239_s12 = int_to_ptr.vmem [resolvable:$true] %s238_s12 }
  0x28   :  { %259 = vmatpush3.msra.mxu0 %v59_v1  ;;  %264 = vmatpush3.msra.mxu1 %v143_v3  ;;  %v250_v11 = vld [vmem:[%s424_s4] ss:$0 sm:$0xff]  ;;  %s338_s2 = scalar_lea.vmem %s239_s12, 128  ;;  %p343_p2 = scmp.lt.s32.totalorder %s239_s12, %s239_s12 }
  0x29   :  { %261 = vmatmul.mubr.msk.f32.vlgmr.msra.gmra.mxu0 %vm67_vm1, %v58_v2  ;;  %265 = vmatprep.subr.mxu1 %v369_v0  ;;  %vm229_vm3 = vcmp.ge.s32.totalorder %v226_v12, 4  ;;  %p339_p1 = scmp.ne.s32.totalorder %s239_s12, %s338_s2  ;;  %p344_p3 = scmp.lt.s32.totalorder %s338_s2, %s338_s2 }
  0x2a   :  { %266 = vmatpush3.msra.mxu1 %v142_v4 }
  0x2b   :  { %p345_p4 = por %p344_p3, %p343_p2 }
  0x2d   :  { %p346_p5 = pnand %p345_p4, %p339_p1 }
  0xe9   :  { %v137_v6 = vpop.f32.mrf.mxu0 }
  0xea   :  { %v138_v7 = vadd.f32 %v248_v5, %v137_v6 }
  0xeb   :  { %v262_v8 = vpop.f32.mrf.mxu0 }
  0xec   :  { %v141_v9 = vmax.f32 %v138_v7, 0.0 }
  0xee   :  { %268 = vmatmul.mubr.msk.f32.vlgmr.msra.gmra.mxu1 %vm151_vm2, %v141_v9 }
 0x1ae   :  { %v221_v13 = vpop.f32.mrf.mxu1 }
 0x1af   :  { %v222_v14 = vadd.f32 %v250_v11, %v221_v13 }
 0x1b0   :  { %v269_v15 = vpop.f32.mrf.mxu1 }
 0x1b1   :  { %v252_v16 = vclamps-f32 %v222_v14, 10.0 }
 0x1b3   :  { %v230_v17 = vsel %vm229_vm3, %v252_v16, %v222_v14 }
 0x1b4   :  { %231 = vst [vmem:[#allocation8] sm:$0xff] %v230_v17 }
 0x1b5   :  { %349 = shalt.err (!%p346_p5)
}
 0x1b6   :  { %241 = dma.vmem_to_hbm [thread:$0]  %s239_s12, 128, %s425_s5, [#allocation4]  }
 0x1b7   :  { %362 = dma.done.wait [#allocation4], 128  }
 0x1b8   :  { %363 = vsyncadd [#allocation4], 4294967168 }
 0x1b9   :  { %245 = vsyncpa [#allocation3], 1 }
 0x1ba   :  { %246 = vsyncpa [#allocation6], 1 }
 0x1bb   :  { %247 = vsyncpa [#allocation4], 1 }

</bundles_post_ra>
